<compile_context>
chip_gen: v5e
topology: v5e:2x2
jax: 0.10.0
libtpu: 0.0.40
codegen_flags: <defaults>
</compile_context>

<pallas_src>
import functools

import jax
import jax.numpy as jnp
from jax import lax
from jax.experimental import pallas as pl
from jax.experimental.pallas import tpu as pltpu


def _glove_bert_kernel(ids_ref,            # [B, S] int32, SMEM (scalar prefetch)
                       table_ref,          # [V, E]  f32, VMEM
                       bert_ref,           # [1, 1, S, Db] bf16/f32, one layer tile
                       rand_g_ref,         # [1, S, E]  f32 dropout uniforms (glove)
                       rand_b_ref,         # [1, S, Db] f32 dropout uniforms (bert)
                       glove_out_ref,      # [1, S, E]  f32
                       bert_out_ref,       # [1, S, Db] f32
                       acc_ref,            # [S, Db] f32 scratch accumulator
                       *, dropout_p: float, inv_num_layers: float):
    b = pl.program_id(0)
    l = pl.program_id(1)
    num_layers = pl.num_programs(1)
    seq_len = acc_ref.shape[0]
    keep_scale = jnp.float32(1.0 / (1.0 - dropout_p)) if dropout_p > 0.0 else jnp.float32(1.0)

    # ---- first layer step: init accumulator, do the GloVe gather + dropout. ----
    @pl.when(l == 0)
    def _init_and_glove():
        acc_ref[...] = jnp.zeros_like(acc_ref)

        # nn.Embedding lookup as a row gather: token ids are scalars in SMEM,
        # each row is a small dynamic sublane slice of the resident table.
        def gather_row(s, carry):
            idx = ids_ref[b, s]
            glove_out_ref[0, pl.ds(s, 1), :] = table_ref[pl.ds(idx, 1), :]
            return carry

        lax.fori_loop(0, seq_len, gather_row, 0)

        if dropout_p > 0.0:  # static branch; no mask work at all when p == 0
            g = glove_out_ref[...]
            keep = rand_g_ref[...] >= jnp.float32(dropout_p)
            glove_out_ref[...] = jnp.where(keep, g * keep_scale, jnp.float32(0.0))

    # ---- stream one BERT encoded layer per grid step into the f32 accumulator. ----
    acc_ref[...] += bert_ref[0, 0].astype(jnp.float32)

    # ---- last layer step: finalize mean, dropout, write the BERT slab. ----
    @pl.when(l == num_layers - 1)
    def _finalize_bert():
        bert_mean = acc_ref[...] * jnp.float32(inv_num_layers)
        if dropout_p > 0.0:
            keep = rand_b_ref[0] >= jnp.float32(dropout_p)
            bert_mean = jnp.where(keep, bert_mean * keep_scale, jnp.float32(0.0))
        bert_out_ref[...] = bert_mean[None, :, :]


def glove_bert_embedding(ids, glove_table, bert_layers, dropout_key, dropout_p=0.1):
    """ids: [B,S] int32; glove_table: [V,E] f32; bert_layers: [L,B,S,768] (bf16 or f32)."""
    B, S = ids.shape
    V, E = glove_table.shape
    L, _, _, Db = bert_layers.shape

    # Host-side dropout uniforms (see TODO(synk) above).  Tiled per batch row
    # by the BlockSpecs; fetched once per row (block index constant in l).
    kg, kb = jax.random.split(dropout_key)
    rand_g = jax.random.uniform(kg, (B, S, E), dtype=jnp.float32)
    rand_b = jax.random.uniform(kb, (B, S, Db), dtype=jnp.float32)

    kernel = functools.partial(_glove_bert_kernel,
                               dropout_p=float(dropout_p),
                               inv_num_layers=1.0 / float(L))

    glove_out, bert_out = pl.pallas_call(
        kernel,
        out_shape=(jax.ShapeDtypeStruct((B, S, E), jnp.float32),
                   jax.ShapeDtypeStruct((B, S, Db), jnp.float32)),
        grid_spec=pltpu.PrefetchScalarGridSpec(
            num_scalar_prefetch=1,                    # token ids land in SMEM
            grid=(B, L),                              # L = reduction axis, last
            in_specs=[
                pl.BlockSpec((V, E), lambda b, l, ids: (0, 0)),              # GloVe table (resident)
                pl.BlockSpec((1, 1, S, Db), lambda b, l, ids: (l, b, 0, 0)),  # one BERT layer tile
                pl.BlockSpec((1, S, E), lambda b, l, ids: (b, 0, 0)),        # dropout uniforms (glove)
                pl.BlockSpec((1, S, Db), lambda b, l, ids: (b, 0, 0)),       # dropout uniforms (bert)
            ],
            out_specs=[
                pl.BlockSpec((1, S, E), lambda b, l, ids: (b, 0, 0)),        # lane-dense glove slab
                pl.BlockSpec((1, S, Db), lambda b, l, ids: (b, 0, 0)),       # lane-dense bert slab
            ],
            scratch_shapes=[pltpu.VMEM((S, Db), jnp.float32)],
        ),
        # Batch axis shards across TensorCores (megacore / v7x 2-TC); layer
        # axis is a sequential reduction.  For very long S, tile S as an extra
        # "parallel" grid axis to keep double-buffering within v7x's 64 MiB.
        compiler_params=pltpu.CompilerParams(
            dimension_semantics=("parallel", "arbitrary")),
    )(ids, glove_table, bert_layers, rand_g, rand_b)

    # torch.cat([embed, bert], dim=2) — done in the wrapper so each kernel
    # store stays lane-dense (E + 768 = not a multiple of 128).
    return jnp.concatenate([glove_out, bert_out], axis=-1)


if __name__ == "__main__":
    # Small shapes consistent with the module's forward.
    B, S = 2, 8            # batch, sentence length
    V, E = 64, 128         # vocab (input_size), GloVe embed_dim (lane-aligned)
    L, Db = 4, 768         # number of BERT encoded layers, BERT hidden size
    P_DROP = 0.1

    key = jax.random.PRNGKey(0)
    k_ids, k_tbl, k_bert, k_drop = jax.random.split(key, 4)

    ids = jax.random.randint(k_ids, (B, S), 0, V, dtype=jnp.int32)
    glove_table = jax.random.normal(k_tbl, (V, E), dtype=jnp.float32)      # pre_build_embedding
    bert_layers = jax.random.normal(k_bert, (L, B, S, Db),
                                    dtype=jnp.float32).astype(jnp.bfloat16)

    out = glove_bert_embedding(ids, glove_table, bert_layers, k_drop, dropout_p=P_DROP)
    out = jax.block_until_ready(out)
    assert out.shape == (B, S, E + Db) and out.dtype == jnp.float32

    # Pure-JAX reference (same math: per-layer bf16 -> f32 cast, sum, / L).
    ref = jnp.concatenate(
        [glove_table[ids], jnp.sum(bert_layers.astype(jnp.float32), axis=0) / L],
        axis=-1)

    # p = 0 path: exact match with the reference (no dropout).
    out_nodrop = jax.block_until_ready(
        glove_bert_embedding(ids, glove_table, bert_layers, k_drop, dropout_p=0.0))
    assert jnp.allclose(out_nodrop, ref, atol=2e-5, rtol=2e-5)

    # p > 0 path: every surviving element equals ref / (1 - p); dropped are 0.
    scaled = jnp.where(jnp.abs(out) > 0, ref * (1.0 / (1.0 - P_DROP)), 0.0)
    assert jnp.allclose(out, scaled, atol=1e-4, rtol=1e-4)

    print("KERNEL_OK")
</pallas_src>

<mosaic_0001>
module attributes {stable_mosaic.version = 11 : i64} {
  func.func @_glove_bert_kernel(%arg0: i32, %arg1: i32, %arg2: memref<2x8xi32, #tpu.memory_space<smem>>, %arg3: memref<64x128xf32, #tpu.memory_space<vmem>>, %arg4: memref<1x1x8x768xbf16, #tpu.memory_space<vmem>>, %arg5: memref<1x8x128xf32, #tpu.memory_space<vmem>>, %arg6: memref<1x8x768xf32, #tpu.memory_space<vmem>>, %arg7: memref<1x8x128xf32, #tpu.memory_space<vmem>>, %arg8: memref<1x8x768xf32, #tpu.memory_space<vmem>>, %arg9: memref<8x768xf32, #tpu.memory_space<vmem>>) attributes {dimension_semantics = [#tpu.dimension_semantics<parallel>, #tpu.dimension_semantics<arbitrary>], iteration_bounds = array<i64: 2, 4>, scalar_prefetch = 1 : i64, scratch_operands = 1 : i64, tpu.core_type = #tpu.core_type<tc>, window_params = [{pipeline_mode = #tpu.pipeline_mode<synchronous>, transform_indices = @transform_0, window_bounds = array<i64: 64, 128>}, {transform_indices = @transform_1, window_bounds = array<i64: 1, 1, 8, 768>}, {transform_indices = @transform_2, window_bounds = array<i64: 1, 8, 128>}, {transform_indices = @transform_3, window_bounds = array<i64: 1, 8, 768>}, {transform_indices = @transform_4, window_bounds = array<i64: 1, 8, 128>}, {transform_indices = @transform_5, window_bounds = array<i64: 1, 8, 768>}]} {
    %c0_i32 = arith.constant 0 : i32
    %0 = arith.cmpi eq, %arg1, %c0_i32 : i32
    %1 = arith.extui %0 : i1 to i32
    %cst = arith.constant 1.11111116 : f32
    %c0_i32_0 = arith.constant 0 : i32
    %2 = arith.cmpi ne, %1, %c0_i32_0 : i32
    scf.if %2 {
      %cst_10 = arith.constant 0.000000e+00 : f32
      %12 = vector.broadcast %cst_10 : f32 to vector<8x768xf32>
      %c0_11 = arith.constant 0 : index
      %c0_12 = arith.constant 0 : index
      %13 = vector.load %arg9[%c0_11, %c0_12] : memref<8x768xf32, #tpu.memory_space<vmem>>, vector<8x768xf32>
      tpu.vector_store %arg9[%c0_11, %c0_12], %12 {strides = array<i32>} : memref<8x768xf32, #tpu.memory_space<vmem>>, vector<8x768xf32>,
      %c0_i32_13 = arith.constant 0 : i32
      %c8_i32 = arith.constant 8 : i32
      %14 = arith.addi %c0_i32_13, %c8_i32 : i32
      %c1_i32 = arith.constant 1 : i32
      scf.for %arg10 = %c0_i32_13 to %14 step %c1_i32  : i32 {
        %24 = arith.index_cast %arg0 : i32 to index
        %25 = arith.index_cast %arg10 : i32 to index
        %26 = memref.load %arg2[%24, %25] : memref<2x8xi32, #tpu.memory_space<smem>>
        %27 = arith.index_cast %26 : i32 to index
        %c0_26 = arith.constant 0 : index
        %28 = vector.load %arg3[%27, %c0_26] : memref<64x128xf32, #tpu.memory_space<vmem>>, vector<1x128xf32>
        %c0_27 = arith.constant 0 : index
        %29 = arith.index_cast %arg10 : i32 to index
        %c0_28 = arith.constant 0 : index
        %30 = vector.load %arg7[%c0_27, %29, %c0_28] : memref<1x8x128xf32, #tpu.memory_space<vmem>>, vector<1x1x128xf32>
        %31 = vector.shape_cast %30 : vector<1x1x128xf32> to vector<1x128xf32>
        %32 = vector.shape_cast %28 : vector<1x128xf32> to vector<1x1x128xf32>
        tpu.vector_store %arg7[%c0_27, %29, %c0_28], %32 {strides = array<i32>} : memref<1x8x128xf32, #tpu.memory_space<vmem>>, vector<1x1x128xf32>,
      }
      %c8_i32_14 = arith.constant 8 : i32
      %c0_15 = arith.constant 0 : index
      %c0_16 = arith.constant 0 : index
      %c0_17 = arith.constant 0 : index
      %15 = vector.load %arg7[%c0_15, %c0_16, %c0_17] : memref<1x8x128xf32, #tpu.memory_space<vmem>>, vector<1x8x128xf32>
      %c0_18 = arith.constant 0 : index
      %c0_19 = arith.constant 0 : index
      %c0_20 = arith.constant 0 : index
      %16 = vector.load %arg5[%c0_18, %c0_19, %c0_20] : memref<1x8x128xf32, #tpu.memory_space<vmem>>, vector<1x8x128xf32>
      %cst_21 = arith.constant 1.000000e-01 : f32
      %17 = vector.broadcast %cst_21 : f32 to vector<1x8x128xf32>
      %18 = arith.cmpf oge, %16, %17 : vector<1x8x128xf32>
      %19 = vector.broadcast %cst : f32 to vector<1x8x128xf32>
      %20 = arith.mulf %15, %19 : vector<1x8x128xf32>
      %cst_22 = arith.constant 0.000000e+00 : f32
      %21 = vector.broadcast %cst_22 : f32 to vector<1x8x128xf32>
      %22 = arith.select %18, %20, %21 : vector<1x8x128xi1>, vector<1x8x128xf32>
      %c0_23 = arith.constant 0 : index
      %c0_24 = arith.constant 0 : index
      %c0_25 = arith.constant 0 : index
      %23 = vector.load %arg7[%c0_23, %c0_24, %c0_25] : memref<1x8x128xf32, #tpu.memory_space<vmem>>, vector<1x8x128xf32>
      tpu.vector_store %arg7[%c0_23, %c0_24, %c0_25], %22 {strides = array<i32>} : memref<1x8x128xf32, #tpu.memory_space<vmem>>, vector<1x8x128xf32>,
    } else {
    }
    %c0 = arith.constant 0 : index
    %c0_1 = arith.constant 0 : index
    %3 = vector.load %arg9[%c0, %c0_1] : memref<8x768xf32, #tpu.memory_space<vmem>>, vector<8x768xf32>
    %c0_2 = arith.constant 0 : index
    %c0_3 = arith.constant 0 : index
    %c0_4 = arith.constant 0 : index
    %c0_5 = arith.constant 0 : index
    %4 = vector.load %arg4[%c0_2, %c0_3, %c0_4, %c0_5] : memref<1x1x8x768xbf16, #tpu.memory_space<vmem>>, vector<1x1x8x768xbf16>
    %5 = vector.shape_cast %4 : vector<1x1x8x768xbf16> to vector<8x768xbf16>
    %6 = arith.extf %5 : vector<8x768xbf16> to vector<8x768xf32>
    %7 = arith.addf %3, %6 : vector<8x768xf32>
    %c0_6 = arith.constant 0 : index
    %c0_7 = arith.constant 0 : index
    %8 = vector.load %arg9[%c0_6, %c0_7] : memref<8x768xf32, #tpu.memory_space<vmem>>, vector<8x768xf32>
    tpu.vector_store %arg9[%c0_6, %c0_7], %7 {strides = array<i32>} : memref<8x768xf32, #tpu.memory_space<vmem>>, vector<8x768xf32>,
    %c3_i32 = arith.constant 3 : i32
    %9 = arith.cmpi eq, %arg1, %c3_i32 : i32
    %10 = arith.extui %9 : i1 to i32
    %cst_8 = arith.constant 1.11111116 : f32
    %c0_i32_9 = arith.constant 0 : i32
    %11 = arith.cmpi ne, %10, %c0_i32_9 : i32
    scf.if %11 {
      %c0_10 = arith.constant 0 : index
      %c0_11 = arith.constant 0 : index
      %12 = vector.load %arg9[%c0_10, %c0_11] : memref<8x768xf32, #tpu.memory_space<vmem>>, vector<8x768xf32>
      %cst_12 = arith.constant 2.500000e-01 : f32
      %13 = vector.broadcast %cst_12 : f32 to vector<8x768xf32>
      %14 = arith.mulf %12, %13 : vector<8x768xf32>
      %c0_13 = arith.constant 0 : index
      %c0_14 = arith.constant 0 : index
      %c0_15 = arith.constant 0 : index
      %15 = vector.load %arg6[%c0_13, %c0_14, %c0_15] : memref<1x8x768xf32, #tpu.memory_space<vmem>>, vector<1x8x768xf32>
      %16 = vector.shape_cast %15 : vector<1x8x768xf32> to vector<8x768xf32>
      %cst_16 = arith.constant 1.000000e-01 : f32
      %17 = vector.broadcast %cst_16 : f32 to vector<8x768xf32>
      %18 = arith.cmpf oge, %16, %17 : vector<8x768xf32>
      %19 = vector.broadcast %cst_8 : f32 to vector<8x768xf32>
      %20 = arith.mulf %14, %19 : vector<8x768xf32>
      %cst_17 = arith.constant 0.000000e+00 : f32
      %21 = vector.broadcast %cst_17 : f32 to vector<8x768xf32>
      %22 = arith.select %18, %20, %21 : vector<8x768xi1>, vector<8x768xf32>
      %23 = vector.shape_cast %22 : vector<8x768xf32> to vector<1x8x768xf32>
      %c0_18 = arith.constant 0 : index
      %c0_19 = arith.constant 0 : index
      %c0_20 = arith.constant 0 : index
      %24 = vector.load %arg8[%c0_18, %c0_19, %c0_20] : memref<1x8x768xf32, #tpu.memory_space<vmem>>, vector<1x8x768xf32>
      tpu.vector_store %arg8[%c0_18, %c0_19, %c0_20], %23 {strides = array<i32>} : memref<1x8x768xf32, #tpu.memory_space<vmem>>, vector<1x8x768xf32>,
    } else {
    }
    return
  }
  func.func @transform_0(%arg0: i32, %arg1: i32, %arg2: memref<2x8xi32, #tpu.memory_space<smem>>) -> (i32, i32) {
    %c0_i32 = arith.constant 0 : i32
    %c0_i32_0 = arith.constant 0 : i32
    %c0_i32_1 = arith.constant 0 : i32
    return %c0_i32, %c0_i32_0 : i32, i32
  }
  func.func @transform_1(%arg0: i32, %arg1: i32, %arg2: memref<2x8xi32, #tpu.memory_space<smem>>) -> (i32, i32, i32, i32) {
    %c0_i32 = arith.constant 0 : i32
    %c0_i32_0 = arith.constant 0 : i32
    %c0_i32_1 = arith.constant 0 : i32
    return %arg1, %arg0, %c0_i32, %c0_i32_0 : i32, i32, i32, i32
  }
  func.func @transform_2(%arg0: i32, %arg1: i32, %arg2: memref<2x8xi32, #tpu.memory_space<smem>>) -> (i32, i32, i32) {
    %c0_i32 = arith.constant 0 : i32
    %c0_i32_0 = arith.constant 0 : i32
    %c0_i32_1 = arith.constant 0 : i32
    return %arg0, %c0_i32, %c0_i32_0 : i32, i32, i32
  }
  func.func @transform_3(%arg0: i32, %arg1: i32, %arg2: memref<2x8xi32, #tpu.memory_space<smem>>) -> (i32, i32, i32) {
    %c0_i32 = arith.constant 0 : i32
    %c0_i32_0 = arith.constant 0 : i32
    %c0_i32_1 = arith.constant 0 : i32
    return %arg0, %c0_i32, %c0_i32_0 : i32, i32, i32
  }
  func.func @transform_4(%arg0: i32, %arg1: i32, %arg2: memref<2x8xi32, #tpu.memory_space<smem>>) -> (i32, i32, i32) {
    %c0_i32 = arith.constant 0 : i32
    %c0_i32_0 = arith.constant 0 : i32
    %c0_i32_1 = arith.constant 0 : i32
    return %arg0, %c0_i32, %c0_i32_0 : i32, i32, i32
  }
  func.func @transform_5(%arg0: i32, %arg1: i32, %arg2: memref<2x8xi32, #tpu.memory_space<smem>>) -> (i32, i32, i32) {
    %c0_i32 = arith.constant 0 : i32
    %c0_i32_0 = arith.constant 0 : i32
    %c0_i32_1 = arith.constant 0 : i32
    return %arg0, %c0_i32, %c0_i32_0 : i32, i32, i32
  }
}

</mosaic_0001>

<bundles_post_ra>
// kernel: tpu_custom_call.1
= control target key start
LH: loop header
LB: loop body
LE: loop exit
PB: predicated region body
PF: predicated region fallthrough
CT: control target
= control target key end

     0   :  { %s1173_s24 = smov [#allocation4]   ;;  %s1505_s0 = inlined_call_operand.hbm [shape: s32[2,8], index: 0, kind: input, shape index: {}]   ;;  %s1506_s1 = inlined_call_operand.hbm [shape: f32[64,128], index: 1, kind: input, shape index: {}]   ;;  %s1507_s2 = inlined_call_operand.hbm [shape: bf16[4,2,8,768], index: 2, kind: input, shape index: {}]   ;;  %s1508_s3 = inlined_call_operand.hbm [shape: f32[2,8,128], index: 3, kind: input, shape index: {}]   ;;  %s1509_s4 = inlined_call_operand.hbm [shape: f32[2,8,768], index: 4, kind: input, shape index: {}]   ;;  %s1510_s5 = inlined_call_operand.hbm [shape: f32[2,8,128], index: 5, kind: output, shape index: {0}]   ;;  %s1511_s6 = inlined_call_operand.hbm [shape: f32[2,8,768], index: 6, kind: output, shape index: {1}]  }
   0x1   :  { %1526 = sst [smem:[#allocation35_spill]] %s1506_s1  ;;  %s13_s23 = sshll.u32 %s1505_s0, 4  ;;  %s14_s23 = int_to_ptr.hbm [resolvable:$true] %s13_s23 }
   0x2   :  { %1527 = sst [smem:[#allocation36_spill]] %s1507_s2 }
   0x3   :  { %1528 = sst [smem:[#allocation37_spill]] %s1510_s5 }
   0x4   :  { %1529 = sst [smem:[#allocation38_spill]] %s1511_s6 }
   0x5   :  { %16 = dma.hbm_to_smem %s14_s23, 32, %s1173_s24, [#allocation3] }
   0x6   :  { %1099 = dma.done.wait [#allocation3], 32 }
   0x7   :  { %1100 = vsyncadd [#allocation3], 4294967264 }
   0x8   :  { %19 = sfence }
   0x9   :  { %20 = vsyncpa [#allocation6], 0 }
   0xa   :  { %21 = vsyncpa [#allocation9], 0 }
   0xb   :  { %23 = vsyncpa [#allocation9 + $0x1], 0 }
   0xc   :  { %24 = vsyncpa [#allocation12], 0 }
   0xd   :  { %26 = vsyncpa [#allocation12 + $0x1], 0 }
   0xe   :  { %27 = vsyncpa [#allocation7], 0 }
   0xf   :  { %29 = vsyncpa [#allocation7 + $0x1], 0 }
  0x10   :  { %30 = vsyncpa [#allocation15], 0 }
  0x11   :  { %32 = vsyncpa [#allocation15 + $0x1], 0  ;;  %s1216_s25 = smov 0   ;;  %s1218_s26 = smov 0  }
  0x12   :  { %s1220_s0 = smov 0   ;;  %s1222_s27 = smov 0  }
  0x13   :  { %s1224_s28 = smov 0   ;;  %s1226_s29 = smov 0  }
  0x14   :  { %s1228_s30 = smov 0   ;;  %s1230_s7 = smov 0  }
  0x15   :  { %s1232_s8 = smov 0   ;;  %s1234_s9 = smov 0  }
  0x16   :  { %s1236_s10 = smov 0  }
  0x17 LB: > { %1530 = sst [smem:[#allocation23_spill]] %s1127_s25  ;;  %s1270_s11 = sadd.s32 4294967295, %s1167_s10   ;;  %s1167_s10 = sphi %s1236_s10, %s38_s10   ;;  %s1163_s9 = sphi %s1234_s9, %s1574_s9   ;;  %s1159_s8 = sphi %s1232_s8, %s1567_s8   ;;  %s1155_s7 = sphi %s1230_s7, %s1573_s7   ;;  %s1151_s30 = sphi %s1228_s30, %s1566_s30   ;;  %s1147_s29 = sphi %s1226_s29, %s1565_s29   ;;  %s1143_s28 = sphi %s1224_s28, %s1572_s28   ;;  %s1139_s27 = sphi %s1222_s27, %s1571_s27   ;;  %s1135_s0 = sphi %s1220_s0, %s1563_s0   ;;  %s1131_s26 = sphi %s1218_s26, %s1570_s26   ;;  %s1127_s25 = sphi %s1216_s25, %s1569_s25  }
  0x18   : > { %1531 = sst [smem:[#allocation24_spill]] %s1135_s0  ;;  %s695_s12 = sadd.s32 4294967294, %s1167_s10  }
  0x19   : > { %1532 = sst [smem:[#allocation25_spill]] %s1147_s29  ;;  %s47_s13 = sadd.s32 1, %s1159_s8 }
  0x1a   : > { %1533 = sst [smem:[#allocation26_spill]] %s1155_s7  ;;  %s50_s14 = sadd.s32 1, %s1163_s9 }
  0x1b   : > { %1534 = sst [smem:[#allocation27_spill]] %s1159_s8  ;;  %p48_p0 = scmp.ge.s32.totalorder %s47_s13, 4 }
  0x1c   : > { %1535 = sst [smem:[#allocation28_spill]] %s1167_s10  ;;  %s80_s15 = sadd.s32 1, %s1147_s29 }
  0x1d   : > { %p87_p1 = scmp.ne.s32.totalorder %s1147_s29, %s1143_s28  ;;  %p88_p2 = scmp.eq.s32.totalorder %s1167_s10, 0 }
  0x1e   : > { %s1576_s13 = smov (%p48_p0, %s47_s13), 0  ;;  %s1578_s14 = smov (!%p48_p0, %s50_s14), %s1163_s9 }
  0x1f   : > { %1536 = sst [smem:[#allocation29_spill]] %s1576_s13  ;;  %s75_s16 = ssub.s32 %s1159_s8, %s1576_s13 }
  0x20   : > { %p1286_p3 = por %p88_p2, %p87_p1  ;;  %p52_p4 = scmp.ge.s32.totalorder %s1578_s14, 2 }
  0x21   : > { %p93_p5 = scmp.ne.s32.totalorder %s1143_s28, %s1139_s27  ;;  %p94_p6 = scmp.eq.s32.totalorder %s1270_s11, 0 }
  0x22   : > { %s106_s18 = sadd.s32 1, %s1135_s0  ;;  %s1580_s14 = smov (%p52_p4, %s1578_s14), 0 }
  0x23   : > { %1538 = sst [smem:[#allocation30_spill]] %s1580_s14  ;;  %p1297_p7 = por %p94_p6, %p93_p5 }
  0x24   : > { %p113_p8 = scmp.ne.s32.totalorder %s1135_s0, %s1131_s26  ;;  %s76_s20 = ssub.s32 %s1163_s9, %s1580_s14 }
  0x25   : > { %p119_p9 = scmp.ne.s32.totalorder %s1131_s26, %s1127_s25  ;;  %s77_s21 = sor.u32 %s76_s20, %s75_s16 }
  0x26   : > { %p104_p10 = scmp.eq.s32.totalorder %s76_s20, 0  ;;  %p78_p11 = scmp.eq.s32.totalorder %s77_s21, 0 }
  0x27   : > { %p1309_p12 = por %p113_p8, %p88_p2  ;;  %p1321_p13 = por %p119_p9, %p94_p6 }
  0x28   : > { %s1314_s23 = scalar_select %p104_p10, %s1135_s0, %s106_s18  }
  0x29   : > { %s1317_s24 = scalar_select %p78_p11, %s1147_s29, %s80_s15  }
  0x2a   : > { %1541 = sst [smem:[#allocation31_spill]] %s1314_s23  ;;  %p169_p0 = scmp.eq.s32.totalorder %s1270_s11, 7 }
  0x2b   : > { %1542 = sst [smem:[#allocation32_spill]] %s1317_s24  ;;  %p175_p1 = scmp.eq.s32.totalorder %s695_s12, 7 }
  0x2c   : > { %p1326_p4 = por %p169_p0, %p113_p8  ;;  %p759_p5 = scmp.lt.s32.totalorder %s1167_s10, 8 }
  0x2d   : > { %p1330_p2 = por %p175_p1, %p119_p9  ;;  %s235_s18 = sand.u32 1, %s1167_s10  }
  0x2e   : > { %s1544_s16 = scalar_select %p1326_p4, 1, 0 }
  0x2f   : > { %s1546_s20 = scalar_select %p1330_p2, 1, 0 }
  0x30   : > { %1545 = sst [smem:[#allocation33_spill]] %s1544_s16  ;;  %s237_s15 = sand.u32 1, %s1147_s29  }
  0x31   : > { %1547 = sst [smem:[#allocation34_spill]] %s1546_s20  ;;  %s715_s21 = smul.u32 24, %s237_s15 }
  0x32   : > { %s716_s14 = smul.u32 6, %s1163_s9  ;;  %p742_p10 = pnand %p759_p5, %p1286_p3 }
  0x33   : > { %s717_s13 = smul.u32 12, %s1159_s8  ;;  %s239_s24 = scalar_lea.vmem [#allocation8], %s715_s21 }
  0x34   : > { %s250_s12 = sshll.u32 %s239_s24, 4  ;;  %p1343_p8 = pnand %p759_p5, %p1309_p12  ;;  %s251_s12 = int_to_ptr.vmem [resolvable:$true] %s250_s12 }
  0x35   : > { %s244_s23 = sadd.s32 %s717_s13, %s716_s14  ;;  %s1549_s2 = sld [smem:[#allocation36_spill]] }
  0x36   : > { %s699_s25 = sshll.u32 %s244_s23, 2  ;;  %s236_s17 = scalar_lea.sflag [#allocation9], %s235_s18 }
  0x37   : > { %p696_p3 = scmp.ge.s32.totalorder %s1167_s10, 1  ;;  %p208_p9 = scmp.lt.s32.totalorder %s1167_s10, 9 }
  0x38   : > { %s1550_s1 = sld [smem:[#allocation35_spill]]  ;;  %s1174_s29 = smov [#allocation5]  }
  0x39   : > { %p1355_p11 = pnand %p696_p3, %p208_p9  ;;  %s221_s24 = sshll.u32 %s1174_s29, 4  ;;  %s222_s24 = int_to_ptr.vmem [resolvable:$true] %s221_s24 }
  0x3a   : > { %s701_s20 = sshll.u32 %s1163_s9, 3  ;;  %s1176_s13 = smov 8  }
  0x3b   : > { %s246_s15 = scalar_lea.hbm %s1549_s2, %s699_s25  ;;  %p737_p12 = pneg %p1355_p11 }
  0x3c   : > { %s248_s5 = sshll.u32 %s246_s15, 4  ;;  %s1175_s15 = smov 128   ;;  %s249_s5 = int_to_ptr.hbm [resolvable:$true] %s248_s5 }
  0x3d   : > { %744 = dma.hbm_to_vmem [thread:$0]  (!%p742_p10), %s249_s5, 384, %s251_s12, %s236_s17  }
  0x3e   : > { %s219_s22 = sshll.u32 %s1550_s1, 4  ;;  %s259_s5 = sand.u32 1, %s1135_s0   ;;  %s220_s22 = int_to_ptr.hbm [resolvable:$true] %s219_s22 }
  0x3f   : > { %p738_p0 = pnand %p737_p12, %p94_p6  ;;  %s700_s25 = sshll.u32 %s259_s5, 3 }
  0x40   : > { %s265_s12 = scalar_lea.hbm %s1508_s3, %s701_s20  ;;  %s261_s29 = scalar_lea.vmem [#allocation10], %s700_s25 }
  0x41   : > { %740 = dma.hbm_to_vmem [thread:$0]  (!%p738_p0), %s220_s22, 1024, %s222_s24, [#allocation6], %s1175_s15, %s1175_s15, %s1176_s13  }
  0x42   : > { %s267_s14 = sshll.u32 %s265_s12, 4  ;;  %s269_s1 = sshll.u32 %s261_s29, 4  ;;  %s268_s14 = int_to_ptr.hbm [resolvable:$true] %s267_s14  ;;  %s270_s1 = int_to_ptr.vmem [resolvable:$true] %s269_s1 }
  0x43   : > { %747 = dma.hbm_to_vmem [thread:$0]  (!%p1343_p8), %s268_s14, 128, %s270_s1, %s236_s17  }
  0x44   : > { %s718_s2 = smul.u32 48, %s259_s5  ;;  %s277_s22 = scalar_lea.sflag [#allocation12], %s259_s5 }
  0x45   : > { %s719_s8 = smul.u32 48, %s1163_s9 }
  0x46   : > { %s280_s7 = scalar_lea.vmem [#allocation11], %s718_s2  ;;  %298 = sbr.rel (%p1355_p11) target bundleno = 200 (0xc8), region = 36 }
  0x47   : > { %s285_s16 = scalar_lea.hbm %s1509_s4, %s719_s8  ;;  %s289_s18 = sshll.u32 %s280_s7, 4  ;;  %s290_s18 = int_to_ptr.vmem [resolvable:$true] %s289_s18 }
  0x48   : > { %s287_s20 = sshll.u32 %s285_s16, 4  ;;  %s288_s20 = int_to_ptr.hbm [resolvable:$true] %s287_s20 }
  0x49   : > { %750 = dma.hbm_to_vmem [thread:$0]  (!%p1343_p8), %s288_s20, 768, %s290_s18, %s277_s22  }
  0x4b   : > { %1102 = dma.done.wait (%p94_p6), [#allocation6], 1024  }
  0x4c   : > { %1104 = vsyncadd (%p94_p6), [#allocation6], 4294966272  ;;  %s305_s1 = sand.u32 1, %s1270_s11   ;;  %s307_s2 = sand.u32 1, %s1143_s28  }
  0x4d   : > { %s720_s0 = smul.u32 24, %s307_s2  ;;  %s306_s7 = scalar_lea.sflag [#allocation9], %s305_s1 }
  0x4f   : > { %s1384_s8 = scalar_lea.vmem [#allocation8], %s720_s0 }
  0x50   : > { %1106 = dma.done.wait (%p1297_p7), %s306_s7, 384  }
  0x51   : > { %1108 = vsyncadd (%p1297_p7), %s306_s7, 4294966912  ;;  %s1391_s6 = sand.u32 1, %s1131_s26  }
  0x52   : > { %s705_s10 = sshll.u32 %s1391_s6, 3 }
  0x53   : > { %s1394_s16 = scalar_lea.vmem [#allocation10], %s705_s10 }
  0x54   : > { %1110 = dma.done.wait (%p1321_p13), %s306_s7, 128  }
  0x55   : > { %1112 = vsyncadd (%p1321_p13), %s306_s7, 4294967168  ;;  %s721_s11 = smul.u32 48, %s1391_s6  ;;  %s326_s17 = scalar_lea.sflag [#allocation12], %s1391_s6 }
  0x57   : > { %s1402_s19 = scalar_lea.vmem [#allocation11], %s721_s11 }
  0x58   : > { %1114 = dma.done.wait (%p1321_p13), %s326_s17, 768  }
  0x59   : > { %1116 = vsyncadd (%p1321_p13), %s326_s17, 4294966528  ;;  %s1408_s23 = scalar_lea.vmem [#allocation13], %s705_s10  ;;  %s1410_s24 = scalar_lea.vmem [#allocation14], %s721_s11 }
  0x5a   : > { %p707_p6 = scmp.ne.s32.totalorder %s1151_s30, 0 }
  0x5b   : > { %s1169_s5 = smov (!%p707_p6), 0  }
  0x5c   : > { %375 = sbr.rel (%p707_p6) target bundleno = 133 (0x85), region = 56 }
  0x61   : > { %v1177_v0 = vmov 0.0  }
  0x62   : > { %376 = vst [vmem:[#allocation2 + $0x28] sm:$0xff] %v1177_v0 }
  0x63   : > { %377 = vst [vmem:[#allocation2 + $0x10] sm:$0xff] %v1177_v0 }
  0x64   : > { %378 = vst [vmem:[#allocation2 + $0x8] sm:$0xff] %v1177_v0 }
  0x65   : > { %379 = vst [vmem:[#allocation2] sm:$0xff] %v1177_v0 }
  0x66   : > { %380 = vst [vmem:[#allocation2 + $0x18] sm:$0xff] %v1177_v0 }
  0x67   : > { %381 = vst [vmem:[#allocation2 + $0x20] sm:$0xff] %v1177_v0 }
  0x68 LB: >> { %s1552_s27 = sld [smem:[#allocation26_spill]]  ;;  %s388_s25 = sshra.s32 %s1171_s5, 7  ;;  %s1171_s5 = sphi %s1169_s5, %s387_s5  }
  0x69   : >> { %s393_s21 = sand.u32 127, %s1171_s5  ;;  %s398_s29 = scalar_lea.vmem %s1408_s23, %s1171_s5 [#allocation13] }
  0x6a   : >> { %s387_s5 = sadd.s32 1, %s1171_s5  }
  0x6b   : >> { %p384_p7 = scmp.ge.s32.totalorder %s387_s5, 8  }
  0x6c   : > { %v401_v3 = vld [vmem:[%s1394_s16] sm:$0xff] (%p384_p7) }
  0x6d   : > { %vm402_vm0 = vcmp.ge.f32.partialorder (%p384_p7), %v401_v3, 0.1 }
  0x6e   : >> { %s390_s12 = sadd.s32 %s1552_s27, %s388_s25 }
  0x6f   : >> { %s708_s15 = sshll.u32 %s390_s12, 7 }
  0x70   : >> { %s394_s13 = sadd.s32 %s708_s15, %s393_s21 }
  0x71   : >> { %s395_s14 = sld [smem:[#allocation4 + %s394_s13]] }
  0x75   : > { %386 = sbr.rel (!%p384_p7) target bundleno = 104 (0x68), region = 144 }
  0x77   : >> { %s396_s18 = scalar_lea.vmem [#allocation5], %s395_s14 }
  0x78   : >> { %v397_v1 = vld [vmem:[%s396_s18] sm:$0x1] }
  0x79   : >> { %399 = vst [vmem:[%s398_s29] sm:$0x1] %v397_v1 }
  0x80   : > { %v400_v2 = vld [vmem:[%s1408_s23] sm:$0xff] }
  0x81   : > { %v403_v4 = vmul.f32 1.1111112, %v400_v2 }
  0x83   : > { %v404_v5 = vsel %vm402_vm0, %v403_v4, 0.0 }
  0x84   : > { %405 = vst [vmem:[%s1408_s23] sm:$0xff] %v404_v5 }
  0x85 PF: > { %v406_v6 = vld [vmem:[#allocation2 + $0x28] sm:$0xff]  ;;  %v407_v8 = vld [vmem:[#allocation2 + $0x10] sm:$0xff]  ;;  %v409_v13 = vld [vmem:[#allocation2] sm:$0xff]  ;;  %p709_p13 = scmp.ne.s32.totalorder %s1151_s30, 3 }
  0x86   : > { %v412_v7 = vld [vmem:[%s1384_s8] sm:$0xff]  ;;  %v413_v12 = vld [vmem:[%s1384_s8 + $0x8] sm:$0xff]  ;;  %v414_v17 = vld [vmem:[%s1384_s8 + $0x10] sm:$0xff] }
  0x87   : > { %v415_v9 = vunpack.c.l.bf16 %v412_v7  ;;  %v416_v10 = vunpack.c.h.bf16 %v412_v7  ;;  %v408_v11 = vld [vmem:[#allocation2 + $0x8] sm:$0xff]  ;;  %v417_v14 = vunpack.c.l.bf16 %v413_v12  ;;  %v418_v15 = vunpack.c.h.bf16 %v413_v12  ;;  %v410_v16 = vld [vmem:[#allocation2 + $0x18] sm:$0xff]  ;;  %v411_v21 = vld [vmem:[#allocation2 + $0x20] sm:$0xff] }
  0x88   : > { %v419_v20 = vunpack.c.l.bf16 %v414_v17  ;;  %v420_v22 = vunpack.c.h.bf16 %v414_v17 }
  0x89   : > { %v421_v18 = vadd.f32 %v415_v9, %v406_v6  ;;  %v422_v19 = vadd.f32 %v416_v10, %v407_v8  ;;  %v423_v23 = vadd.f32 %v417_v14, %v408_v11  ;;  %v424_v24 = vadd.f32 %v418_v15, %v409_v13 }
  0x8a   : > { %v425_v25 = vadd.f32 %v419_v20, %v410_v16  ;;  %v426_v26 = vadd.f32 %v420_v22, %v411_v21 }
  0x8b   : > { %427 = vst [vmem:[#allocation2 + $0x28] sm:$0xff] %v421_v18 }
  0x8c   : > { %428 = vst [vmem:[#allocation2 + $0x10] sm:$0xff] %v422_v19  ;;  %436 = sbr.rel (%p709_p13) target bundleno = 158 (0x9e), region = 67 }
  0x8d   : > { %429 = vst [vmem:[#allocation2 + $0x8] sm:$0xff] %v423_v23 }
  0x8e   : > { %430 = vst [vmem:[#allocation2] sm:$0xff] %v424_v24 }
  0x8f   : > { %431 = vst [vmem:[#allocation2 + $0x18] sm:$0xff] %v425_v25 }
  0x90   : > { %432 = vst [vmem:[#allocation2 + $0x20] sm:$0xff] %v426_v26 }
  0x91   : > { %v449_v28 = vld [vmem:[%s1402_s19] sm:$0xff]  ;;  %v450_v32 = vld [vmem:[%s1402_s19 + $0x8] sm:$0xff]  ;;  %v451_v35 = vld [vmem:[%s1402_s19 + $0x10] sm:$0xff] }
  0x92   : > { %v437_v27 = vld [vmem:[#allocation2 + $0x28] sm:$0xff]  ;;  %vm455_vm1 = vcmp.ge.f32.partialorder %v449_v28, 0.1  ;;  %vm456_vm2 = vcmp.ge.f32.partialorder %v450_v32, 0.1  ;;  %v453_v46 = vld [vmem:[%s1402_s19 + $0x20] sm:$0xff] }
  0x93   : > { %v438_v29 = vld [vmem:[#allocation2 + $0x10] sm:$0xff]  ;;  %v443_v30 = vmul.f32 0.25, %v437_v27  ;;  %v452_v37 = vld [vmem:[%s1402_s19 + $0x18] sm:$0xff]  ;;  %vm457_vm3 = vcmp.ge.f32.partialorder %v451_v35, 0.1  ;;  %v454_v48 = vld [vmem:[%s1402_s19 + $0x28] sm:$0xff] }
  0x94   : > { %v444_v31 = vmul.f32 0.25, %v438_v29  ;;  %v439_v33 = vld [vmem:[#allocation2 + $0x8] sm:$0xff]  ;;  %vm458_vm4 = vcmp.ge.f32.partialorder %v452_v37, 0.1  ;;  %vm459_vm5 = vcmp.ge.f32.partialorder %v453_v46, 0.1 }
  0x95   : > { %v445_v34 = vmul.f32 0.25, %v439_v33  ;;  %v440_v36 = vld [vmem:[#allocation2] sm:$0xff]  ;;  %v461_v38 = vmul.f32 1.1111112, %v443_v30  ;;  %vm460_vm6 = vcmp.ge.f32.partialorder %v454_v48, 0.1 }
  0x96   : > { %v462_v39 = vmul.f32 1.1111112, %v444_v31  ;;  %v446_v41 = vmul.f32 0.25, %v440_v36  ;;  %v441_v42 = vld [vmem:[#allocation2 + $0x18] sm:$0xff] }
  0x97   : > { %v463_v40 = vmul.f32 1.1111112, %v445_v34  ;;  %v467_v43 = vsel %vm455_vm1, %v461_v38, 0.0  ;;  %v447_v45 = vmul.f32 0.25, %v441_v42  ;;  %v442_v47 = vld [vmem:[#allocation2 + $0x20] sm:$0xff] }
  0x98   : > { %v468_v44 = vsel %vm456_vm2, %v462_v39, 0.0  ;;  %473 = vst [vmem:[%s1410_s24] sm:$0xff] %v467_v43  ;;  %v464_v50 = vmul.f32 1.1111112, %v446_v41  ;;  %v448_v51 = vmul.f32 0.25, %v442_v47 }
  0x99   : > { %v469_v49 = vsel %vm457_vm3, %v463_v40, 0.0  ;;  %474 = vst [vmem:[%s1410_s24 + $0x8] sm:$0xff] %v468_v44  ;;  %v465_v52 = vmul.f32 1.1111112, %v447_v45 }
  0x9a   : > { %475 = vst [vmem:[%s1410_s24 + $0x10] sm:$0xff] %v469_v49  ;;  %v470_v53 = vsel %vm458_vm4, %v464_v50, 0.0  ;;  %v466_v54 = vmul.f32 1.1111112, %v448_v51 }
  0x9b   : > { %476 = vst [vmem:[%s1410_s24 + $0x18] sm:$0xff] %v470_v53  ;;  %v471_v55 = vsel %vm459_vm5, %v465_v52, 0.0 }
  0x9c   : > { %477 = vst [vmem:[%s1410_s24 + $0x20] sm:$0xff] %v471_v55  ;;  %v472_v56 = vsel %vm460_vm6, %v466_v54, 0.0 }
  0x9d   : > { %478 = vst [vmem:[%s1410_s24 + $0x28] sm:$0xff] %v472_v56 }
  0x9e PF: > { %s1553_s30 = sld [smem:[#allocation26_spill]]  ;;  %s497_s8 = sshll.u32 %s1408_s23, 4  ;;  %s498_s8 = int_to_ptr.vmem [resolvable:$true] %s497_s8 }
  0x9f   : > { %s1555_s0 = sld [smem:[#allocation37_spill]]  ;;  %s480_s11 = scalar_lea.sflag [#allocation7], %s1391_s6 }
  0xa4   : > { %s711_s22 = sshll.u32 %s1553_s30, 3 }
  0xa5   : > { %s1556_s16 = smov %s1555_s0  ;;  %s495_s7 = scalar_lea.hbm %s1555_s0, %s711_s22 }
  0xa6   : > { %s499_s10 = sshll.u32 %s495_s7, 4  ;;  %s1015_s25 = scalar_lea.hbm %s1556_s16, 16  ;;  %s500_s10 = int_to_ptr.hbm [resolvable:$true] %s499_s10 }
  0xa7   : > { %s1009_s17 = sshra.s32 %s500_s10, 4  ;;  %s1010_s17 = int_to_ptr.hbm [resolvable:$true] %s1009_s17 }
  0xa8   : > { %s1011_s19 = scalar_lea.hbm %s1010_s17, 8  ;;  %p1016_p8 = scmp.lt.s32.totalorder %s1010_s17, %s1556_s16 }
  0xa9   : > { %p1012_p1 = scmp.ne.s32.totalorder %s1010_s17, %s1011_s19  ;;  %p1017_p3 = scmp.lt.s32.totalorder %s1015_s25, %s1011_s19 }
  0xab   : > { %p1013_p5 = pnand %p1012_p1, %p1326_p4  ;;  %p1018_p9 = por %p1017_p3, %p1016_p8 }
  0xad   : > { %p1014_p10 = pneg %p1013_p5 }
  0xaf   : > { %p1019_p11 = pnand %p1018_p9, %p1014_p10 }
  0xb1   : > { %1022 = shalt.err (!%p1019_p11)
}
  0xb2   : > { %733 = dma.vmem_to_hbm [thread:$0]  (%p1326_p4), %s498_s8, 128, %s500_s10, %s480_s11  }
  0xb3   : > { %s722_s23 = smul.u32 48, %s1553_s30  ;;  %s512_s15 = sshll.u32 %s1410_s24, 4  ;;  %s513_s15 = int_to_ptr.vmem [resolvable:$true] %s512_s15 }
  0xb4   : > { %s1557_s29 = sld [smem:[#allocation38_spill]]  ;;  %s485_s2 = scalar_lea.sflag [#allocation15], %s1391_s6 }
  0xba   : > { %s1558_s18 = smov %s1557_s29  ;;  %s510_s22 = scalar_lea.hbm %s1557_s29, %s722_s23 }
  0xbb   : > { %s514_s1 = sshll.u32 %s510_s22, 4  ;;  %s1043_s30 = scalar_lea.hbm %s1558_s18, 96  ;;  %s515_s1 = int_to_ptr.hbm [resolvable:$true] %s514_s1 }
  0xbc   : > { %s1037_s0 = sshra.s32 %s515_s1, 4  ;;  %s1038_s0 = int_to_ptr.hbm [resolvable:$true] %s1037_s0 }
  0xbd   : > { %s1039_s7 = scalar_lea.hbm %s1038_s0, 48  ;;  %p1044_p7 = scmp.lt.s32.totalorder %s1038_s0, %s1558_s18 }
  0xbe   : > { %p1040_p12 = scmp.ne.s32.totalorder %s1038_s0, %s1039_s7  ;;  %p1045_p13 = scmp.lt.s32.totalorder %s1043_s30, %s1039_s7 }
  0xc0   : > { %p1041_p0 = pnand %p1040_p12, %p1326_p4  ;;  %p1046_p1 = por %p1045_p13, %p1044_p7 }
  0xc2   : > { %p1042_p6 = pneg %p1041_p0 }
  0xc4   : > { %p1047_p5 = pnand %p1046_p1, %p1042_p6 }
  0xc6   : > { %1050 = shalt.err (!%p1047_p5)
}
  0xc7   : > { %734 = dma.vmem_to_hbm [thread:$0]  (%p1326_p4), %s513_s15, 768, %s515_s1, %s485_s2  }
  0xc8 PF: > { %s1559_s6 = sld [smem:[#allocation28_spill]] }
  0xc9   : > { %s1560_s10 = sld [smem:[#allocation23_spill]] }
  0xce   : > { %p761_p10 = scmp.ge.s32.totalorder %s1559_s6, 2 }
  0xcf   : > { %s526_s5 = sand.u32 1, %s1560_s10  }
  0xd0   : > { %p752_p8 = pnand %p761_p10, %p1330_p2  ;;  %s527_s27 = scalar_lea.sflag [#allocation7], %s526_s5 }
  0xd2   : > { %p753_p3 = pneg %p752_p8 }
  0xd4   : > { %1118 = dma.done.wait (%p753_p3), %s527_s27, 128  }
  0xd5   : > { %1120 = vsyncadd (%p753_p3), %s527_s27, 4294967168  ;;  %s537_s25 = scalar_lea.sflag [#allocation15], %s526_s5 }
  0xd6   : > { %1122 = dma.done.wait (%p753_p3), %s537_s25, 768  }
  0xd7   : > { %1124 = vsyncadd (%p753_p3), %s537_s25, 4294966528  ;;  %s38_s10 = sadd.s32 1, %s1559_s6   ;;  %s1562_s20 = sld [smem:[#allocation24_spill]] }
  0xd8   : > { %p35_p9 = scmp.ge.s32.totalorder %s38_s10, 10   ;;  %s1563_s0 = sld [smem:[#allocation31_spill]] }
  0xd9   : > { %s1564_s21 = sld [smem:[#allocation25_spill]]  ;;  %s1569_s25 = smov %s1131_s26 }
  0xda   : > { %s1565_s29 = sld [smem:[#allocation32_spill]]  ;;  %s1571_s27 = smov %s1143_s28 }
  0xdb   : > { %s1566_s30 = sld [smem:[#allocation27_spill]]  ;;  %s1573_s7 = smov %s1163_s9 }
  0xdc   : > { %s1567_s8 = sld [smem:[#allocation29_spill]] }
  0xdd   : > { %s1568_s12 = sld [smem:[#allocation30_spill]]  ;;  %s1570_s26 = smov %s1562_s20 }
  0xdf   : > { %s1572_s28 = smov %s1564_s21  ;;  %37 = sbr.rel (!%p35_p9) target bundleno = 23 (0x17), region = 155 }
  0xe3   : > { %s1574_s9 = smov %s1568_s12 }
  0xe4   :  { %543 = vsyncpa [#allocation6], 1 }
  0xe5   :  { %545 = vsyncpa [#allocation6 + $0x1], 1 }
  0xe6   :  { %546 = vsyncpa [#allocation9], 1 }
  0xe7   :  { %548 = vsyncpa [#allocation9 + $0x1], 1 }
  0xe8   :  { %549 = vsyncpa [#allocation12], 1 }
  0xe9   :  { %551 = vsyncpa [#allocation12 + $0x1], 1 }
  0xea   :  { %552 = vsyncpa [#allocation7], 1 }
  0xeb   :  { %554 = vsyncpa [#allocation7 + $0x1], 1 }
  0xec   :  { %555 = vsyncpa [#allocation15], 1 }
  0xed   :  { %557 = vsyncpa [#allocation15 + $0x1], 1 }

</bundles_post_ra>
